<compile_context>
chip_gen: v7x
topology: tpu7x:2x2x1
jax: 0.10.0
libtpu: 0.0.40
codegen_flags: <defaults>
</compile_context>

<pallas_src>
import functools

import jax
import jax.numpy as jnp
from jax.experimental import pallas as pl
from jax.experimental.pallas import tpu as pltpu

EPS = 1e-8
_LANE = 128


# ---------------------------------------------------------------------------
# Small helpers (sizing)
# ---------------------------------------------------------------------------
def _cdiv(a, b):
    return -(-a // b)


def _pad_up(n, m):
    return _cdiv(max(int(n), 1), m) * m


def _sublane_mult(dtype):
    # f32 -> 8 sublanes, bf16 -> 16, int8/fp8 -> 32 (packed along sublanes).
    return max(8, 32 // jnp.dtype(dtype).itemsize)


def _slab_bytes(sub, lane, dtype):
    """Padded VMEM footprint of one (sub, lane) tile of `dtype` (per batch elem)."""
    dt = jnp.dtype(dtype)
    return _pad_up(sub, _sublane_mult(dt)) * _pad_up(lane, _LANE) * dt.itemsize


def _vmem_config():
    """(vmem_limit_bytes, per-buffer-set tile budget) for the current chip."""
    cap = 128 * 1024 * 1024                    # v5e / v6e physical VMEM
    try:                                       # v7x: 64 MiB per TensorCore
        info = pltpu.get_tpu_info()
        cap = int(getattr(info, "vmem_capacity_bytes", cap) or cap)
    except Exception:
        pass
    limit = int(min(cap // 2, 64 * 1024 * 1024))       # 64 MiB v5e/v6e, 32 MiB v7x
    budget = int(max(limit // 3, 2 * 1024 * 1024))      # headroom for compiler scratch
    return limit, budget


def _compiler_params(vmem_limit):
    return pltpu.CompilerParams(
        dimension_semantics=("parallel",),     # batch axis: megacore / 2-TC sharding
        vmem_limit_bytes=vmem_limit,
    )


def _choose_block_batch(B, bytes_per_batch, budget, min_steps=8):
    bb = max(1, budget // max(int(bytes_per_batch), 1))
    bb = min(bb, B)
    # Keep the grid >= min_steps so the pipeline can double-buffer and (v7x)
    # both TensorCores get work; a no-op when B is tiny.
    bb = min(bb, max(1, _cdiv(B, min_steps)))
    # Prefer a block that divides B (avoids a ragged, padded last block).
    while bb > 1 and B % bb:
        bb -= 1
    return int(bb)


# ---------------------------------------------------------------------------
# Kernels
# ---------------------------------------------------------------------------
def _apply_affine(x_native, x_f32, scale, shift, out_dtype):
    """Per-element x*scale + shift.  bf16 epilogue when I/O is bf16 (2 elems/lane
    on v6e/v7x VALU; v5e upcasts in the compiler, stays correct)."""
    if (jnp.dtype(out_dtype) == jnp.dtype(jnp.bfloat16)
            and jnp.dtype(x_native.dtype) == jnp.dtype(jnp.bfloat16)):
        return x_native * scale.astype(jnp.bfloat16) + shift.astype(jnp.bfloat16)
    return (x_f32 * scale + shift).astype(out_dtype)


def _forward_stats_affine(x_ref, gamma_ref, beta_ref, out_ref, avg_ref, var_ref,
                          time_axis, inv_nm1):
    """Stats over the time axis + normalize + affine. Returns (scale, shift)."""
    x_nat = x_ref[...]
    x = x_nat.astype(jnp.float32)
    mean = jnp.mean(x, axis=time_axis, keepdims=True)
    # Two-pass variance (numerically robust vs. one-pass sumsq cancellation).
    d = x - mean
    var = jnp.sum(d * d, axis=time_axis, keepdims=True) * jnp.float32(inv_nm1)

    gamma = gamma_ref[...].astype(jnp.float32)
    beta = beta_ref[...].astype(jnp.float32)
    inv_std = jax.lax.rsqrt(var + jnp.float32(EPS))     # EUP slot, small slab
    scale = inv_std * gamma                              # small slab
    shift = beta - mean * scale                          # small slab

    out_ref[...] = _apply_affine(x_nat, x, scale, shift, out_ref.dtype)
    avg_ref[...] = mean
    var_ref[...] = var
    return scale, shift


def _revin_forward_kernel(x_ref, gamma_ref, beta_ref,
                          out_ref, avg_ref, var_ref, *, time_axis, inv_nm1):
    _forward_stats_affine(x_ref, gamma_ref, beta_ref, out_ref, avg_ref, var_ref,
                          time_axis, inv_nm1)


def _revin_forward_fused_kernel(x_ref, dec_ref, gamma_ref, beta_ref,
                                out_ref, dec_out_ref, avg_ref, var_ref,
                                *, time_axis, inv_nm1):
    scale, shift = _forward_stats_affine(x_ref, gamma_ref, beta_ref,
                                         out_ref, avg_ref, var_ref,
                                         time_axis, inv_nm1)
    dec_nat = dec_ref[...]
    dec = dec_nat.astype(jnp.float32)
    dec_out_ref[...] = _apply_affine(dec_nat, dec, scale, shift, dec_out_ref.dtype)


def _revin_inverse_kernel(y_ref, avg_ref, var_ref, gamma_ref, beta_ref, out_ref):
    """inverse_process: (y - beta) / gamma * sqrt(var + eps) + avg."""
    y_nat = y_ref[...]
    y = y_nat.astype(jnp.float32)
    mean = avg_ref[...].astype(jnp.float32)
    var = var_ref[...].astype(jnp.float32)
    gamma = gamma_ref[...].astype(jnp.float32)
    beta = beta_ref[...].astype(jnp.float32)

    s = jnp.sqrt(var + jnp.float32(EPS)) / gamma          # divide on small slab only
    shift = mean - beta * s
    out_ref[...] = _apply_affine(y_nat, y, s, shift, out_ref.dtype)


# ---------------------------------------------------------------------------
# Wrappers
# ---------------------------------------------------------------------------
def revin_forward(batch_x, gamma, beta, dec_inp=None, *,
                  block_batch=None, channels_first=None):
    """RevIN forward mode.

    Returns (normalized batch_x, normalized dec_inp or None, avg, var) with
    avg/var shaped (B, 1, C) like the PyTorch module's self.avg / self.var.
    """
    B, T, C = batch_x.shape
    x_dtype = batch_x.dtype
    if channels_first is None:
        # With [B, T, C] the channel dim sits on the 128-wide lane axis; for
        # small C the VPU and the output stores are mostly masked -> go
        # channels-first via a one-time wrapper transpose.
        channels_first = C <= 64
    inv_nm1 = (1.0 / (T - 1)) if T > 1 else float("nan")   # torch unbiased var: nan @ T==1
    vmem_limit, tile_budget = _vmem_config()

    gamma_c = jnp.broadcast_to(jnp.asarray(gamma, jnp.float32).reshape(-1), (C,))
    beta_c = jnp.broadcast_to(jnp.asarray(beta, jnp.float32).reshape(-1), (C,))

    Td = None if dec_inp is None else dec_inp.shape[1]

    if channels_first:
        time_axis = 2
        x_in = jnp.transpose(batch_x, (0, 2, 1))                         # (B, C, T)
        dec_in = None if dec_inp is None else jnp.transpose(dec_inp, (0, 2, 1))
        g3 = gamma_c.reshape(1, C, 1)
        b3 = beta_c.reshape(1, C, 1)
        sub, lane = C, T
        dsub, dlane = (C, Td) if Td is not None else (0, 0)
        stat_shape = (B, C, 1)
        stat_sub, stat_lane = C, 1
        x_block = lambda bb: (bb, C, T)
        dec_block = lambda bb: (bb, C, Td)
        stat_block = lambda bb: (bb, C, 1)
    else:
        time_axis = 1
        x_in = batch_x
        dec_in = dec_inp
        g3 = gamma_c.reshape(1, 1, C)
        b3 = beta_c.reshape(1, 1, C)
        sub, lane = T, C
        dsub, dlane = (Td, C) if Td is not None else (0, 0)
        stat_shape = (B, 1, C)
        stat_sub, stat_lane = 1, C
        x_block = lambda bb: (bb, T, C)
        dec_block = lambda bb: (bb, Td, C)
        stat_block = lambda bb: (bb, 1, C)

    # Pad-aware per-batch-element VMEM footprint: native-dtype I/O tiles are
    # double-buffered by the pipeline (x2 each), f32 temporaries (x, diff)
    # live once, stats outputs are small but also double-buffered.
    per_b = 2 * 2 * _slab_bytes(sub, lane, x_dtype)                # x in + out
    per_b += 2 * _slab_bytes(sub, lane, jnp.float32)               # f32 x + diff
    per_b += 2 * 2 * _slab_bytes(stat_sub, stat_lane, jnp.float32)  # avg + var outs
    if dec_in is not None:
        per_b += 2 * 2 * _slab_bytes(dsub, dlane, dec_in.dtype)
        per_b += _slab_bytes(dsub, dlane, jnp.float32)

    Bb = block_batch if block_batch is not None else _choose_block_batch(B, per_b, tile_budget)
    grid = (_cdiv(B, Bb),)
    cparams = _compiler_params(vmem_limit)

    if dec_in is None:
        kernel = functools.partial(_revin_forward_kernel,
                                   time_axis=time_axis, inv_nm1=inv_nm1)
        out, avg, var = pl.pallas_call(
            kernel,
            out_shape=(
                jax.ShapeDtypeStruct(x_in.shape, x_dtype),
                jax.ShapeDtypeStruct(stat_shape, jnp.float32),
                jax.ShapeDtypeStruct(stat_shape, jnp.float32),
            ),
            grid_spec=pltpu.PrefetchScalarGridSpec(
                num_scalar_prefetch=0,
                grid=grid,
                in_specs=[
                    pl.BlockSpec(x_block(Bb), lambda b: (b, 0, 0)),
                    pl.BlockSpec(g3.shape, lambda b: (0, 0, 0)),
                    pl.BlockSpec(b3.shape, lambda b: (0, 0, 0)),
                ],
                out_specs=[
                    pl.BlockSpec(x_block(Bb), lambda b: (b, 0, 0)),
                    pl.BlockSpec(stat_block(Bb), lambda b: (b, 0, 0)),
                    pl.BlockSpec(stat_block(Bb), lambda b: (b, 0, 0)),
                ],
            ),
            compiler_params=cparams,
        )(x_in, g3, b3)
        dec_out = None
    else:
        kernel = functools.partial(_revin_forward_fused_kernel,
                                   time_axis=time_axis, inv_nm1=inv_nm1)
        out, dec_out, avg, var = pl.pallas_call(
            kernel,
            out_shape=(
                jax.ShapeDtypeStruct(x_in.shape, x_dtype),
                jax.ShapeDtypeStruct(dec_in.shape, dec_in.dtype),
                jax.ShapeDtypeStruct(stat_shape, jnp.float32),
                jax.ShapeDtypeStruct(stat_shape, jnp.float32),
            ),
            grid_spec=pltpu.PrefetchScalarGridSpec(
                num_scalar_prefetch=0,
                grid=grid,
                in_specs=[
                    pl.BlockSpec(x_block(Bb), lambda b: (b, 0, 0)),
                    pl.BlockSpec(dec_block(Bb), lambda b: (b, 0, 0)),
                    pl.BlockSpec(g3.shape, lambda b: (0, 0, 0)),
                    pl.BlockSpec(b3.shape, lambda b: (0, 0, 0)),
                ],
                out_specs=[
                    pl.BlockSpec(x_block(Bb), lambda b: (b, 0, 0)),
                    pl.BlockSpec(dec_block(Bb), lambda b: (b, 0, 0)),
                    pl.BlockSpec(stat_block(Bb), lambda b: (b, 0, 0)),
                    pl.BlockSpec(stat_block(Bb), lambda b: (b, 0, 0)),
                ],
            ),
            compiler_params=cparams,
        )(x_in, dec_in, g3, b3)

    if channels_first:
        out = jnp.transpose(out, (0, 2, 1))
        if dec_out is not None:
            dec_out = jnp.transpose(dec_out, (0, 2, 1))
        avg = jnp.transpose(avg, (0, 2, 1))                # -> (B, 1, C)
        var = jnp.transpose(var, (0, 2, 1))
    return out, dec_out, avg, var


def revin_inverse(batch_y, avg, var, gamma, beta, *,
                  block_batch=None, channels_first=None):
    """RevIN inverse mode using previously computed stats (avg/var: (B,1,C))."""
    B, T, C = batch_y.shape
    y_dtype = batch_y.dtype
    if channels_first is None:
        channels_first = C <= 64
    vmem_limit, tile_budget = _vmem_config()

    gamma_c = jnp.broadcast_to(jnp.asarray(gamma, jnp.float32).reshape(-1), (C,))
    beta_c = jnp.broadcast_to(jnp.asarray(beta, jnp.float32).reshape(-1), (C,))
    avg32 = jnp.asarray(avg, jnp.float32)
    var32 = jnp.asarray(var, jnp.float32)

    if channels_first:
        y_in = jnp.transpose(batch_y, (0, 2, 1))           # (B, C, T)
        avg_in = jnp.transpose(avg32, (0, 2, 1))            # (B, C, 1)
        var_in = jnp.transpose(var32, (0, 2, 1))
        g3 = gamma_c.reshape(1, C, 1)
        b3 = beta_c.reshape(1, C, 1)
        sub, lane = C, T
        stat_sub, stat_lane = C, 1
        y_block = lambda bb: (bb, C, T)
        stat_block = lambda bb: (bb, C, 1)
    else:
        y_in, avg_in, var_in = batch_y, avg32, var32
        g3 = gamma_c.reshape(1, 1, C)
        b3 = beta_c.reshape(1, 1, C)
        sub, lane = T, C
        stat_sub, stat_lane = 1, C
        y_block = lambda bb: (bb, T, C)
        stat_block = lambda bb: (bb, 1, C)

    per_b = 2 * 2 * _slab_bytes(sub, lane, y_dtype)                 # y in + out
    per_b += _slab_bytes(sub, lane, jnp.float32)                    # f32 temp
    per_b += 2 * 2 * 2 * _slab_bytes(stat_sub, stat_lane, jnp.float32)  # avg+var ins

    Bb = block_batch if block_batch is not None else _choose_block_batch(B, per_b, tile_budget)
    grid = (_cdiv(B, Bb),)

    out = pl.pallas_call(
        _revin_inverse_kernel,
        out_shape=jax.ShapeDtypeStruct(y_in.shape, y_dtype),
        grid_spec=pltpu.PrefetchScalarGridSpec(
            num_scalar_prefetch=0,
            grid=grid,
            in_specs=[
                pl.BlockSpec(y_block(Bb), lambda b: (b, 0, 0)),
                pl.BlockSpec(stat_block(Bb), lambda b: (b, 0, 0)),
                pl.BlockSpec(stat_block(Bb), lambda b: (b, 0, 0)),
                pl.BlockSpec(g3.shape, lambda b: (0, 0, 0)),
                pl.BlockSpec(b3.shape, lambda b: (0, 0, 0)),
            ],
            out_specs=pl.BlockSpec(y_block(Bb), lambda b: (b, 0, 0)),
        ),
        compiler_params=_compiler_params(vmem_limit),
    )(y_in, avg_in, var_in, g3, b3)

    if channels_first:
        out = jnp.transpose(out, (0, 2, 1))
    return out


# ---------------------------------------------------------------------------
# Reference (plain JAX) for verification
# ---------------------------------------------------------------------------
def _ref_forward(x, gamma, beta):
    avg = jnp.mean(x, axis=1, keepdims=True)
    var = jnp.var(x, axis=1, keepdims=True, ddof=1)     # torch.var unbiased
    out = (x - avg) / jnp.sqrt(var + EPS) * gamma + beta
    return out, avg, var


if __name__ == "__main__":
    # Module init: n_series=C, affine=True -> gamma=ones(C), beta=zeros(C).
    B, T, C = 2, 16, 8
    key = jax.random.PRNGKey(0)
    kx, kd, kg, kb = jax.random.split(key, 4)
    batch_x = jax.random.normal(kx, (B, T, C), dtype=jnp.float32) * 2.0 + 3.0
    dec_inp = jax.random.normal(kd, (B, T, C), dtype=jnp.float32)
    gamma = jnp.ones((C,), dtype=jnp.float32)
    beta = jnp.zeros((C,), dtype=jnp.float32)

    # Default path: C=8 -> channels-first (lane-dense) layout, fused dec_inp.
    out, dec_out, avg, var = revin_forward(batch_x, gamma, beta, dec_inp)
    inv = revin_inverse(out, avg, var, gamma, beta)
    jax.block_until_ready((out, dec_out, avg, var, inv))

    ref_out, ref_avg, ref_var = _ref_forward(batch_x, gamma, beta)
    ref_dec = (dec_inp - ref_avg) / jnp.sqrt(ref_var + EPS) * gamma + beta
    assert jnp.allclose(out, ref_out, atol=1e-5, rtol=1e-5)
    assert jnp.allclose(dec_out, ref_dec, atol=1e-5, rtol=1e-5)
    assert jnp.allclose(avg, ref_avg, atol=1e-5, rtol=1e-5)
    assert jnp.allclose(var, ref_var, atol=1e-5, rtol=1e-5)
    assert jnp.allclose(inv, batch_x, atol=1e-4, rtol=1e-4)    # round-trip

    # Channels-last path, non-trivial affine, multi-block grid with a ragged
    # last block (B=3, Bb=2), and dec_inp=None.
    B2 = 3
    k2, k3 = jax.random.split(kg)
    x2 = jax.random.normal(k2, (B2, T, C), dtype=jnp.float32)
    gamma2 = jax.random.uniform(k3, (C,), minval=0.5, maxval=1.5, dtype=jnp.float32)
    beta2 = jax.random.normal(kb, (C,), dtype=jnp.float32) * 0.1

    out2, none_dec, avg2, var2 = revin_forward(
        x2, gamma2, beta2, None, block_batch=2, channels_first=False)
    inv2 = revin_inverse(out2, avg2, var2, gamma2, beta2,
                         block_batch=2, channels_first=False)
    jax.block_until_ready((out2, avg2, var2, inv2))

    ref_out2, ref_avg2, ref_var2 = _ref_forward(x2, gamma2, beta2)
    assert none_dec is None
    assert jnp.allclose(out2, ref_out2, atol=1e-5, rtol=1e-5)
    assert jnp.allclose(avg2, ref_avg2, atol=1e-5, rtol=1e-5)
    assert jnp.allclose(var2, ref_var2, atol=1e-5, rtol=1e-5)
    assert jnp.allclose(inv2, x2, atol=1e-4, rtol=1e-4)

    print("KERNEL_OK")
</pallas_src>

<mosaic_0001>
module attributes {stable_mosaic.version = 11 : i64} {
  func.func @_revin_forward_fused_kernel(%arg0: i32, %arg1: memref<1x8x16xf32, #tpu.memory_space<vmem>>, %arg2: memref<1x8x16xf32, #tpu.memory_space<vmem>>, %arg3: memref<1x8x1xf32, #tpu.memory_space<vmem>>, %arg4: memref<1x8x1xf32, #tpu.memory_space<vmem>>, %arg5: memref<1x8x16xf32, #tpu.memory_space<vmem>>, %arg6: memref<1x8x16xf32, #tpu.memory_space<vmem>>, %arg7: memref<1x8x1xf32, #tpu.memory_space<vmem>>, %arg8: memref<1x8x1xf32, #tpu.memory_space<vmem>>) attributes {dimension_semantics = [#tpu.dimension_semantics<parallel>], iteration_bounds = array<i64: 2>, scalar_prefetch = 0 : i64, scratch_operands = 0 : i64, tpu.core_type = #tpu.core_type<tc>, window_params = [{transform_indices = @transform_0, window_bounds = array<i64: 1, 8, 16>}, {transform_indices = @transform_1, window_bounds = array<i64: 1, 8, 16>}, {pipeline_mode = #tpu.pipeline_mode<synchronous>, transform_indices = @transform_2, window_bounds = array<i64: 1, 8, 1>}, {pipeline_mode = #tpu.pipeline_mode<synchronous>, transform_indices = @transform_3, window_bounds = array<i64: 1, 8, 1>}, {transform_indices = @transform_4, window_bounds = array<i64: 1, 8, 16>}, {transform_indices = @transform_5, window_bounds = array<i64: 1, 8, 16>}, {transform_indices = @transform_6, window_bounds = array<i64: 1, 8, 1>}, {transform_indices = @transform_7, window_bounds = array<i64: 1, 8, 1>}]} {
    %c0 = arith.constant 0 : index
    %c0_0 = arith.constant 0 : index
    %c0_1 = arith.constant 0 : index
    %0 = vector.load %arg1[%c0, %c0_0, %c0_1] : memref<1x8x16xf32, #tpu.memory_space<vmem>>, vector<1x8x16xf32>
    %cst = arith.constant dense<0.000000e+00> : vector<1x8xf32>
    %1 = vector.multi_reduction <add>, %0, %cst [2] : vector<1x8x16xf32> to vector<1x8xf32>
    %2 = vector.shape_cast %1 : vector<1x8xf32> to vector<1x8x1xf32>
    %cst_2 = arith.constant 1.600000e+01 : f32
    %3 = vector.broadcast %cst_2 : f32 to vector<1x8x1xf32>
    %4 = arith.divf %2, %3 : vector<1x8x1xf32>
    %5 = vector.broadcast %4 : vector<1x8x1xf32> to vector<1x8x16xf32>
    %6 = arith.subf %0, %5 : vector<1x8x16xf32>
    %7 = arith.mulf %6, %6 : vector<1x8x16xf32>
    %cst_3 = arith.constant dense<0.000000e+00> : vector<1x8xf32>
    %8 = vector.multi_reduction <add>, %7, %cst_3 [2] : vector<1x8x16xf32> to vector<1x8xf32>
    %9 = vector.shape_cast %8 : vector<1x8xf32> to vector<1x8x1xf32>
    %cst_4 = arith.constant 0.0666666701 : f32
    %10 = vector.broadcast %cst_4 : f32 to vector<1x8x1xf32>
    %11 = arith.mulf %9, %10 : vector<1x8x1xf32>
    %c0_5 = arith.constant 0 : index
    %c0_6 = arith.constant 0 : index
    %c0_7 = arith.constant 0 : index
    %12 = vector.load %arg3[%c0_5, %c0_6, %c0_7] : memref<1x8x1xf32, #tpu.memory_space<vmem>>, vector<1x8x1xf32>
    %c0_8 = arith.constant 0 : index
    %c0_9 = arith.constant 0 : index
    %c0_10 = arith.constant 0 : index
    %13 = vector.load %arg4[%c0_8, %c0_9, %c0_10] : memref<1x8x1xf32, #tpu.memory_space<vmem>>, vector<1x8x1xf32>
    %cst_11 = arith.constant 9.99999993E-9 : f32
    %14 = vector.broadcast %cst_11 : f32 to vector<1x8x1xf32>
    %15 = arith.addf %11, %14 : vector<1x8x1xf32>
    %16 = math.rsqrt %15 : vector<1x8x1xf32>
    %17 = arith.mulf %16, %12 : vector<1x8x1xf32>
    %18 = arith.mulf %4, %17 : vector<1x8x1xf32>
    %19 = arith.subf %13, %18 : vector<1x8x1xf32>
    %20 = vector.broadcast %17 : vector<1x8x1xf32> to vector<1x8x16xf32>
    %21 = arith.mulf %0, %20 : vector<1x8x16xf32>
    %22 = vector.broadcast %19 : vector<1x8x1xf32> to vector<1x8x16xf32>
    %23 = arith.addf %21, %22 : vector<1x8x16xf32>
    %c0_12 = arith.constant 0 : index
    %c0_13 = arith.constant 0 : index
    %c0_14 = arith.constant 0 : index
    %24 = vector.load %arg5[%c0_12, %c0_13, %c0_14] : memref<1x8x16xf32, #tpu.memory_space<vmem>>, vector<1x8x16xf32>
    tpu.vector_store %arg5[%c0_12, %c0_13, %c0_14], %23 {strides = array<i32>} : memref<1x8x16xf32, #tpu.memory_space<vmem>>, vector<1x8x16xf32>,
    %c0_15 = arith.constant 0 : index
    %c0_16 = arith.constant 0 : index
    %c0_17 = arith.constant 0 : index
    %25 = vector.load %arg7[%c0_15, %c0_16, %c0_17] : memref<1x8x1xf32, #tpu.memory_space<vmem>>, vector<1x8x1xf32>
    tpu.vector_store %arg7[%c0_15, %c0_16, %c0_17], %4 {strides = array<i32>} : memref<1x8x1xf32, #tpu.memory_space<vmem>>, vector<1x8x1xf32>,
    %c0_18 = arith.constant 0 : index
    %c0_19 = arith.constant 0 : index
    %c0_20 = arith.constant 0 : index
    %26 = vector.load %arg8[%c0_18, %c0_19, %c0_20] : memref<1x8x1xf32, #tpu.memory_space<vmem>>, vector<1x8x1xf32>
    tpu.vector_store %arg8[%c0_18, %c0_19, %c0_20], %11 {strides = array<i32>} : memref<1x8x1xf32, #tpu.memory_space<vmem>>, vector<1x8x1xf32>,
    %c0_21 = arith.constant 0 : index
    %c0_22 = arith.constant 0 : index
    %c0_23 = arith.constant 0 : index
    %27 = vector.load %arg2[%c0_21, %c0_22, %c0_23] : memref<1x8x16xf32, #tpu.memory_space<vmem>>, vector<1x8x16xf32>
    %28 = vector.broadcast %17 : vector<1x8x1xf32> to vector<1x8x16xf32>
    %29 = arith.mulf %27, %28 : vector<1x8x16xf32>
    %30 = vector.broadcast %19 : vector<1x8x1xf32> to vector<1x8x16xf32>
    %31 = arith.addf %29, %30 : vector<1x8x16xf32>
    %c0_24 = arith.constant 0 : index
    %c0_25 = arith.constant 0 : index
    %c0_26 = arith.constant 0 : index
    %32 = vector.load %arg6[%c0_24, %c0_25, %c0_26] : memref<1x8x16xf32, #tpu.memory_space<vmem>>, vector<1x8x16xf32>
    tpu.vector_store %arg6[%c0_24, %c0_25, %c0_26], %31 {strides = array<i32>} : memref<1x8x16xf32, #tpu.memory_space<vmem>>, vector<1x8x16xf32>,
    return
  }
  func.func @transform_0(%arg0: i32) -> (i32, i32, i32) {
    %c0_i32 = arith.constant 0 : i32
    %c0_i32_0 = arith.constant 0 : i32
    %c0_i32_1 = arith.constant 0 : i32
    return %arg0, %c0_i32, %c0_i32_0 : i32, i32, i32
  }
  func.func @transform_1(%arg0: i32) -> (i32, i32, i32) {
    %c0_i32 = arith.constant 0 : i32
    %c0_i32_0 = arith.constant 0 : i32
    %c0_i32_1 = arith.constant 0 : i32
    return %arg0, %c0_i32, %c0_i32_0 : i32, i32, i32
  }
  func.func @transform_2(%arg0: i32) -> (i32, i32, i32) {
    %c0_i32 = arith.constant 0 : i32
    %c0_i32_0 = arith.constant 0 : i32
    %c0_i32_1 = arith.constant 0 : i32
    %c0_i32_2 = arith.constant 0 : i32
    return %c0_i32, %c0_i32_0, %c0_i32_1 : i32, i32, i32
  }
  func.func @transform_3(%arg0: i32) -> (i32, i32, i32) {
    %c0_i32 = arith.constant 0 : i32
    %c0_i32_0 = arith.constant 0 : i32
    %c0_i32_1 = arith.constant 0 : i32
    %c0_i32_2 = arith.constant 0 : i32
    return %c0_i32, %c0_i32_0, %c0_i32_1 : i32, i32, i32
  }
  func.func @transform_4(%arg0: i32) -> (i32, i32, i32) {
    %c0_i32 = arith.constant 0 : i32
    %c0_i32_0 = arith.constant 0 : i32
    %c0_i32_1 = arith.constant 0 : i32
    return %arg0, %c0_i32, %c0_i32_0 : i32, i32, i32
  }
  func.func @transform_5(%arg0: i32) -> (i32, i32, i32) {
    %c0_i32 = arith.constant 0 : i32
    %c0_i32_0 = arith.constant 0 : i32
    %c0_i32_1 = arith.constant 0 : i32
    return %arg0, %c0_i32, %c0_i32_0 : i32, i32, i32
  }
  func.func @transform_6(%arg0: i32) -> (i32, i32, i32) {
    %c0_i32 = arith.constant 0 : i32
    %c0_i32_0 = arith.constant 0 : i32
    %c0_i32_1 = arith.constant 0 : i32
    return %arg0, %c0_i32, %c0_i32_0 : i32, i32, i32
  }
  func.func @transform_7(%arg0: i32) -> (i32, i32, i32) {
    %c0_i32 = arith.constant 0 : i32
    %c0_i32_0 = arith.constant 0 : i32
    %c0_i32_1 = arith.constant 0 : i32
    return %arg0, %c0_i32, %c0_i32_0 : i32, i32, i32
  }
}

</mosaic_0001>

<bundles_post_ra>
// kernel: tpu_custom_call.1
= control target key start
LH: loop header
LB: loop body
LE: loop exit
PB: predicated region body
PF: predicated region fallthrough
CT: control target
= control target key end

     0   :  { %s1539_s0 = inlined_call_operand.hbm [shape: f32[2,8,16], index: 0, kind: input, shape index: {}]   ;;  %s1540_s1 = inlined_call_operand.hbm [shape: f32[2,8,16], index: 1, kind: input, shape index: {}]   ;;  %s1541_s2 = inlined_call_operand.hbm [shape: f32[1,8,1], index: 2, kind: input, shape index: {}]   ;;  %s1542_s3 = inlined_call_operand.hbm [shape: f32[1,8,1], index: 3, kind: input, shape index: {}]   ;;  %s1543_s4 = inlined_call_operand.hbm [shape: f32[2,8,16], index: 4, kind: output, shape index: {0}]   ;;  %s1544_s5 = inlined_call_operand.hbm [shape: f32[2,8,16], index: 5, kind: output, shape index: {1}]   ;;  %s1545_s6 = inlined_call_operand.hbm [shape: f32[2,8,1], index: 6, kind: output, shape index: {2}]   ;;  %s1546_s7 = inlined_call_operand.hbm [shape: f32[2,8,1], index: 7, kind: output, shape index: {3}]  }
   0x1   :  { %1553 = sst [smem:[#allocation25_spill]] %s1541_s2 }
   0x2   :  { %1554 = sst [smem:[#allocation26_spill]] %s1542_s3 }
   0x3   :  { %13 = vsyncpa [#allocation3], 0 }
   0x4   :  { %15 = vsyncpa [#allocation3 + $0x1], 0 }
   0x5   :  { %16 = vsyncpa [#allocation6], 0 }
   0x6   :  { %18 = vsyncpa [#allocation6 + $0x1], 0 }
   0x7   :  { %19 = vsyncpa [#allocation9], 0 }
   0x8   :  { %20 = vsyncpa [#allocation4], 0 }
   0x9   :  { %22 = vsyncpa [#allocation4 + $0x1], 0 }
   0xa   :  { %23 = vsyncpa [#allocation12], 0 }
   0xb   :  { %25 = vsyncpa [#allocation12 + $0x1], 0 }
   0xc   :  { %26 = vsyncpa [#allocation15], 0 }
   0xd   :  { %28 = vsyncpa [#allocation15 + $0x1], 0  ;;  %s1154_s24 = smov 0   ;;  %s1156_s25 = smov 0  }
   0xe   :  { %s1158_s26 = smov 0   ;;  %s1160_s27 = smov 0  }
   0xf LB: > { %1555 = sst [smem:[#allocation23_spill]] %s1099_s26  ;;  %s1175_s28 = sadd.s32 4294967295, %s1103_s27   ;;  %s1103_s27 = sphi %s1160_s27, %s1580_s27   ;;  %s1099_s26 = sphi %s1158_s26, %s1577_s26   ;;  %s1095_s25 = sphi %s1156_s25, %s1579_s25   ;;  %s1091_s24 = sphi %s1154_s24, %s1578_s24  }
  0x10   : > { %s1550_s29 = sadd.s32 4294967294, %s1103_s27   ;;  %p54_p0 = scmp.ne.s32.totalorder %s1095_s25, %s1091_s24 }
  0x11   : > { %p1547_p1 = scmp.eq.s32.totalorder %s1175_s28, 0  ;;  %p152_p3 = scmp.eq.s32.totalorder %s1550_s29, 1 }
  0x12   : > { %p698_p5 = scmp.ge.s32.totalorder %s1103_s27, 1  ;;  %p237_p7 = scmp.lt.s32.totalorder %s1103_s27, 3 }
  0x13   : > { %p1186_p4 = por %p1547_p1, %p54_p0  ;;  %p1191_p6 = por %p152_p3, %p54_p0 }
  0x14   : > { %p1196_p8 = pnand %p698_p5, %p237_p7  ;;  %s1105_s10 = smov [#allocation7]  }
  0x15   : > { %s1556_s30 = scalar_select %p1186_p4, 1, 0 }
  0x16   : > { %s1557_s8 = scalar_select %p1191_p6, 1, 0 }
  0x17   : > { %s1558_s9 = scalar_select %p1196_p8, 1, 0 }
  0x18   : > { %s250_s11 = sshll.u32 %s1105_s10, 4  ;;  %p745_p10 = pneg %p1196_p8  ;;  %s251_s11 = int_to_ptr.vmem [resolvable:$true] %s250_s11 }
  0x19   : > { %s1106_s12 = smov [#allocation8]   ;;  %s1212_s15 = sadd.s32 1, %s1103_s27  }
  0x1a   : > { %s261_s13 = sshll.u32 %s1106_s12, 4  ;;  %p1205_p11 = pnand %p745_p10, %p1547_p1  ;;  %s1209_s13 = int_to_ptr.vmem [resolvable:$true] %s261_s13 }
  0x1b   : > { %s38_s16 = ssub.s32 %s1103_s27, %s1212_s15  ;;  %s1560_s2 = sld [smem:[#allocation25_spill]] }
  0x1c   : > { %p819_p13 = pneg %p1205_p11 }
  0x21   : > { %s817_s19 = scalar_lea.hbm %s1560_s2, 128 }
  0x22   : > { %p818_p12 = scmp.ne.s32.totalorder %s1560_s2, %s817_s19  ;;  %p824_p5 = scmp.lt.u32.totalorder %s817_s19, %s1560_s2 }
  0x24   : > { %p820_p0 = pnand %p819_p13, %p818_p12 }
  0x26   : > { %p821_p3 = pneg %p820_p0 }
  0x28   : > { %p826_p7 = pnand %p824_p5, %p821_p3 }
  0x2a   : > { %829 = shalt.err (!%p826_p7)
}
  0x2b   : > { %s830_s10 = scalar_lea.vmem %s251_s11, 128  ;;  %p838_p2 = scmp.lt.s32.totalorder %s251_s11, %s251_s11 }
  0x2c   : > { %p831_p10 = scmp.ne.s32.totalorder %s251_s11, %s830_s10  ;;  %p839_p6 = scmp.lt.s32.totalorder %s830_s10, %s830_s10 }
  0x2e   : > { %p833_p9 = pnand %p831_p10, %p819_p13  ;;  %p840_p4 = por %p839_p6, %p838_p2 }
  0x30   : > { %p834_p1 = pneg %p833_p9 }
  0x32   : > { %p841_p8 = pnand %p840_p4, %p834_p1 }
  0x34   : > { %844 = shalt.err (!%p841_p8)
}
  0x35   : > { %748 = dma.hbm_to_vmem [thread:$0]  (!%p1205_p11), %s1560_s2, 128, %s251_s11, [#allocation6]  }
  0x36   : > { %s1561_s3 = sld [smem:[#allocation26_spill]] }
  0x3c   : > { %s845_s20 = scalar_lea.hbm %s1561_s3, 128 }
  0x3d   : > { %p846_p9 = scmp.ne.s32.totalorder %s1561_s3, %s845_s20  ;;  %p852_p4 = scmp.lt.u32.totalorder %s845_s20, %s1561_s3 }
  0x3f   : > { %p848_p2 = pnand %p846_p9, %p819_p13 }
  0x41   : > { %p849_p1 = pneg %p848_p2 }
  0x43   : > { %p854_p6 = pnand %p852_p4, %p849_p1 }
  0x45   : > { %857 = shalt.err (!%p854_p6)
}
  0x46   : > { %s858_s11 = scalar_lea.vmem %s1209_s13, 128  ;;  %p866_p3 = scmp.lt.s32.totalorder %s1209_s13, %s1209_s13 }
  0x47   : > { %p859_p8 = scmp.ne.s32.totalorder %s1209_s13, %s858_s11  ;;  %p867_p5 = scmp.lt.s32.totalorder %s858_s11, %s858_s11 }
  0x49   : > { %p861_p12 = pnand %p859_p8, %p819_p13  ;;  %p868_p7 = por %p867_p5, %p866_p3 }
  0x4b   : > { %p862_p0 = pneg %p861_p12 }
  0x4d   : > { %p869_p10 = pnand %p868_p7, %p862_p0 }
  0x4f   : > { %872 = shalt.err (!%p869_p10)
}
  0x50   : > { %751 = dma.hbm_to_vmem [thread:$0]  (!%p1205_p11), %s1561_s3, 128, %s1209_s13, [#allocation9]  }
  0x51   : > { %p39_p13 = scmp.eq.s32.totalorder %s38_s16, 0  ;;  %s41_s18 = sadd.s32 1, %s1099_s26 }
  0x52   : > { %p48_p9 = scmp.ne.s32.totalorder %s1099_s26, %s1095_s25  ;;  %p49_p2 = scmp.eq.s32.totalorder %s1103_s27, 0 }
  0x53   : > { %s1271_s14 = scalar_select %p39_p13, %s1099_s26, %s41_s18  }
  0x54   : > { %p50_p1 = por %p49_p2, %p48_p9  ;;  %p1563_p4 = scmp.eq.s32.totalorder %s1175_s28, 1 }
  0x55   : > { %1562 = sst [smem:[#allocation24_spill]] %s1271_s14  ;;  %p774_p8 = scmp.lt.s32.totalorder %s1103_s27, 2 }
  0x56   : > { %p1275_p6 = por %p1563_p4, %p48_p9  ;;  %s272_s20 = sand.u32 1, %s1099_s26  }
  0x57   : > { %s1281_s21 = sshll.u32 %s272_s20, 3  ;;  %s703_s13 = sshll.u32 %s1103_s27, 7 }
  0x58   : > { %s1564_s19 = scalar_select %p1275_p6, 1, 0 }
  0x59   : > { %s1287_s23 = scalar_lea.hbm %s1539_s0, %s703_s13  ;;  %s276_s10 = scalar_lea.vmem [#allocation2], %s1281_s21 }
  0x5a   : > { %s283_s11 = sshll.u32 %s276_s10, 4  ;;  %p1292_p11 = pnand %p774_p8, %p50_p1  ;;  %s1290_s11 = int_to_ptr.vmem [resolvable:$true] %s283_s11 }
  0x5b   : > { %s1299_s22 = scalar_lea.hbm %s1540_s1, %s703_s13  ;;  %s290_s16 = sand.u32 1, %s1103_s27  }
  0x5c   : > { %s273_s29 = scalar_lea.sflag [#allocation3], %s272_s20  ;;  %s873_s2 = scalar_lea.hbm %s1287_s23, 128 }
  0x5d   : > { %p874_p12 = scmp.ne.s32.totalorder %s1287_s23, %s873_s2  ;;  %p875_p0 = pneg %p1292_p11 }
  0x5e   : > { %s878_s14 = scalar_lea.hbm %s1539_s0, 256  ;;  %p879_p7 = scmp.lt.u32.totalorder %s1287_s23, %s1539_s0 }
  0x5f   : > { %p876_p3 = pnand %p875_p0, %p874_p12  ;;  %p880_p10 = scmp.lt.u32.totalorder %s878_s14, %s873_s2 }
  0x60   : > { %p882_p9 = scmp.lt.u32.totalorder %s873_s2, %s1287_s23 }
  0x61   : > { %p877_p5 = pneg %p876_p3  ;;  %p881_p13 = por %p880_p10, %p879_p7 }
  0x63   : > { %p883_p2 = por %p882_p9, %p881_p13 }
  0x65   : > { %p884_p1 = pnand %p883_p2, %p877_p5 }
  0x67   : > { %887 = shalt.err (!%p884_p1)
}
  0x68   : > { %s888_s20 = scalar_lea.vmem %s1290_s11, 128  ;;  %s1107_s3 = smov [#allocation2]  }
  0x69   : > { %p889_p4 = scmp.ne.s32.totalorder %s1290_s11, %s888_s20  ;;  %s893_s13 = sshll.u32 %s1107_s3, 4  ;;  %s894_s13 = int_to_ptr.vmem [resolvable:$false] %s893_s13 }
  0x6a   : > { %s895_s26 = scalar_lea.vmem %s894_s13, 256  ;;  %p896_p3 = scmp.lt.s32.totalorder %s1290_s11, %s894_s13 }
  0x6b   : > { %p891_p8 = pnand %p889_p4, %p875_p0  ;;  %p897_p7 = scmp.lt.s32.totalorder %s895_s26, %s888_s20 }
  0x6d   : > { %p892_p12 = pneg %p891_p8  ;;  %p898_p10 = por %p897_p7, %p896_p3 }
  0x6f   : > { %p899_p13 = pnand %p898_p10, %p892_p12 }
  0x71   : > { %902 = shalt.err (!%p899_p13)
}
  0x72   : > { %755 = dma.hbm_to_vmem [thread:$0]  (!%p1292_p11), %s1287_s23, 128, %s1290_s11, %s273_s29  }
  0x73   : > { %s294_s2 = scalar_lea.vmem [#allocation5], %s1281_s21  ;;  %s291_s18 = scalar_lea.sflag [#allocation6], %s290_s16 }
  0x74   : > { %s301_s14 = sshll.u32 %s294_s2, 4  ;;  %s903_s10 = scalar_lea.hbm %s1299_s22, 128  ;;  %s302_s14 = int_to_ptr.vmem [resolvable:$true] %s301_s14 }
  0x75   : > { %p904_p5 = scmp.ne.s32.totalorder %s1299_s22, %s903_s10  ;;  %s908_s3 = scalar_lea.hbm %s1540_s1, 256 }
  0x76   : > { %p909_p1 = scmp.lt.u32.totalorder %s1299_s22, %s1540_s1  ;;  %p910_p4 = scmp.lt.u32.totalorder %s908_s3, %s903_s10 }
  0x77   : > { %p906_p9 = pnand %p904_p5, %p875_p0  ;;  %p912_p12 = scmp.lt.u32.totalorder %s903_s10, %s1299_s22 }
  0x78   : > { %p911_p8 = por %p910_p4, %p909_p1 }
  0x79   : > { %p907_p2 = pneg %p906_p9 }
  0x7a   : > { %p913_p3 = por %p912_p12, %p911_p8 }
  0x7c   : > { %p914_p7 = pnand %p913_p3, %p907_p2 }
  0x7e   : > { %917 = shalt.err (!%p914_p7)
}
  0x7f   : > { %s918_s29 = scalar_lea.vmem %s302_s14, 128  ;;  %s1108_s21 = smov [#allocation5]  }
  0x80   : > { %p919_p10 = scmp.ne.s32.totalorder %s302_s14, %s918_s29  ;;  %s923_s23 = sshll.u32 %s1108_s21, 4  ;;  %s924_s23 = int_to_ptr.vmem [resolvable:$false] %s923_s23 }
  0x81   : > { %s925_s11 = scalar_lea.vmem %s924_s23, 256  ;;  %p926_p9 = scmp.lt.s32.totalorder %s302_s14, %s924_s23 }
  0x82   : > { %p921_p13 = pnand %p919_p10, %p875_p0  ;;  %p927_p6 = scmp.lt.s32.totalorder %s925_s11, %s918_s29 }
  0x84   : > { %p922_p5 = pneg %p921_p13  ;;  %p928_p1 = por %p927_p6, %p926_p9 }
  0x86   : > { %p929_p4 = pnand %p928_p1, %p922_p5 }
  0x88   : > { %932 = shalt.err (!%p929_p4)
}
  0x89   : > { %758 = dma.hbm_to_vmem [thread:$0]  (!%p1292_p11), %s1299_s22, 128, %s302_s14, %s291_s18  }
  0x8a   : > { %p1566_p2 = scmp.ne.s32.totalorder %s1558_s9, 0 }
  0x8b   : > { %s1352_s16 = sand.u32 (!%p1566_p2), 1, %s1095_s25   ;;  %p1567_p6 = scmp.ne.s32.totalorder (!%p1566_p2), %s1556_s30, 0 }
  0x8c   : > { %310 = sbr.rel (%p1566_p2) target bundleno = 667 (0x29b), region = 36  ;;  %s1355_s2 = sshll.u32 (!%p1566_p2), %s1352_s16, 3 }
  0x8d   : > { %s313_s10 = scalar_lea.sflag (!%p1566_p2), [#allocation3], %s1352_s16  ;;  %s316_s17 = scalar_lea.vmem (!%p1566_p2), [#allocation2], %s1355_s2 }
  0x93   : > { %1062 = dma.done.wait (%p1567_p6), %s313_s10, 128  }
  0x94   : > { %1064 = vsyncadd (%p1567_p6), %s313_s10, 4294967168  ;;  %s321_s9 = sand.u32 1, %s1175_s28   ;;  %s325_s22 = scalar_lea.vmem [#allocation5], %s1355_s2 }
  0x95   : > { %s322_s12 = scalar_lea.sflag [#allocation6], %s321_s9 }
  0x96   : > { %1066 = dma.done.wait (%p1567_p6), %s322_s12, 128  }
  0x97   : > { %1068 = vsyncadd (%p1567_p6), %s322_s12, 4294967168  ;;  %p1568_p11 = scmp.eq.s32.totalorder %s1175_s28, 0 }
  0x99   : > { %1070 = dma.done.wait (%p1568_p11), [#allocation6], 128   ;;  %p1569_p0 = pmov %p1568_p11 }
  0x9b   : > { %1072 = vsyncadd (%p1569_p0), [#allocation6], 4294967168  ;;  %p1570_p8 = pmov %p1569_p0 }
  0x9c   : > { %p1571_p12 = pmov %p1569_p0 }
  0x9d   : > { %1074 = dma.done.wait (%p1570_p8), [#allocation9], 128  }
  0x9e   : > { %1076 = vsyncadd (%p1571_p12), [#allocation9], 4294967168  ;;  %vm385_vm0 = vcmask 130048   ;;  %v1379_v0 = vld [vmem:[%s316_s17] sm:$0xff]  ;;  %vm417_vm1 = vcmask 7168   ;;  %s376_s30 = scalar_lea.vmem [#allocation13], %s1355_s2 }
  0x9f   : > { %v386_v1 = vsel %vm385_vm0, %v1379_v0, 0.0  ;;  %v1109_v7 = vmov 0   ;;  %s383_s14 = scalar_lea.vmem [#allocation14], %s1355_s2  ;;  %v397_v11 = vld [vmem:[#allocation7] sm:$0xff]  ;;  %v398_v14 = vld [vmem:[#allocation8] sm:$0xff]  ;;  %s1390_s18 = sshll.u32 %s1175_s28, 7 }
  0xa0   : > { %387 = vadd.xlane.f32.xlu0 %v386_v1  ;;  %813 = vset.pattern.permute.xlu1 %v1109_v7  ;;  %s1396_s13 = scalar_lea.hbm %s1546_s7, %s1390_s18  ;;  %s492_s26 = sshll.u32 %s383_s14, 4  ;;  %s493_s26 = int_to_ptr.vmem [resolvable:$true] %s492_s26 }
  0xa1   : > { %814 = vset.pattern.permute.xlu0 %v1109_v7  ;;  %s440_s29 = scalar_lea.sflag [#allocation15], %s1352_s16  ;;  %s933_s21 = scalar_lea.vmem %s493_s26, 128 }
  0xa2   : > { %p934_p3 = scmp.ne.s32.totalorder %s493_s26, %s933_s21  ;;  %p1572_p7 = scmp.ne.s32.totalorder %s1564_s19, 0 }
  0xa3   : > { %s1110_s23 = smov [#allocation14]  }
  0xa4   : > { %p935_p10 = pnand %p934_p3, %p1572_p7  ;;  %s937_s11 = sshll.u32 %s1110_s23, 4  ;;  %s938_s11 = int_to_ptr.vmem [resolvable:$false] %s937_s11 }
  0xa5   : > { %s939_s10 = scalar_lea.vmem %s938_s11, 256  ;;  %p940_p5 = scmp.lt.s32.totalorder %s493_s26, %s938_s11 }
  0xa6   : > { %p936_p13 = pneg %p935_p10  ;;  %p941_p9 = scmp.lt.s32.totalorder %s939_s10, %s933_s21 }
  0xa8   : > { %p942_p1 = por %p941_p9, %p940_p5 }
  0xaa   : > { %p943_p4 = pnand %p942_p1, %p936_p13 }
 0x12d   : > { %v388_v2 = vpop.xlane.xlu0 %387 }
 0x12e   : > { %v390_v3 = vmul.f32 0.0625, %v388_v2 }
 0x130   : > { %v391_v4 = vsub.f32 %v1379_v0, %v390_v3  ;;  %418 = vst.msk [vmem:[%s376_s30] sm:$0xff] %vm417_vm1, %v390_v3 }
 0x132   : > { %v392_v5 = vmul.f32 %v391_v4, %v391_v4 }
 0x134   : > { %v393_v6 = vsel %vm385_vm0, %v392_v5, 0.0 }
 0x135   : > { %394 = vadd.xlane.f32.xlu0 %v393_v6 }
 0x1c2   : > { %v395_v8 = vpop.xlane.xlu0 %394 }
 0x1c3   : > { %v396_v9 = vmul.f32 0.06666667, %v395_v8 }
 0x1c5   : > { %v399_v10 = vadd.f32 1e-08, %v396_v9  ;;  %419 = vst.msk [vmem:[%s383_s14] sm:$0xff] %vm417_vm1, %v396_v9 }
 0x1c7   : > { %815 = vrsqrt.f32 %v399_v10 }
 0x1d1   : > { %v816_v12 = vpop.eup %815 }
 0x1d2   : > { %v401_v13 = vmul.f32 %v816_v12, %v397_v11 }
 0x1d4   : > { %406 = vperm.xlu1 %813, %v401_v13   ;;  %v402_v15 = vmul.f32 %v401_v13, %v390_v3 }
 0x1d6   : > { %v403_v16 = vsub.f32 %v398_v14, %v402_v15 }
 0x1d8   : > { %412 = vperm.xlu1 %813, %v403_v16  }
 0x1d9   : > { %946 = shalt.err (!%p943_p4)
}
 0x1da   : > { %s947_s17 = scalar_lea.hbm %s1396_s13, 128  ;;  %s951_s20 = scalar_lea.hbm %s1546_s7, 256 }
 0x1db   : > { %p948_p2 = scmp.ne.s32.totalorder %s1396_s13, %s947_s17  ;;  %p952_p0 = scmp.lt.u32.totalorder %s1396_s13, %s1546_s7 }
 0x1dc   : > { %p953_p8 = scmp.lt.u32.totalorder %s951_s20, %s947_s17  ;;  %p955_p3 = scmp.lt.u32.totalorder %s947_s17, %s1396_s13 }
 0x1dd   : > { %p949_p6 = pnand %p948_p2, %p1572_p7 }
 0x1de   : > { %p954_p12 = por %p953_p8, %p952_p0 }
 0x1df   : > { %p950_p11 = pneg %p949_p6 }
 0x1e0   : > { %p956_p10 = por %p955_p3, %p954_p12 }
 0x1e2   : > { %p957_p13 = pnand %p956_p10, %p950_p11 }
 0x1e4   : > { %960 = shalt.err (!%p957_p13)
}
 0x1e5   : > { %740 = dma.vmem_to_hbm [thread:$0]  (%p1572_p7), %s493_s26, 128, %s1396_s13, %s440_s29   ;;  %v420_v17 = vld [vmem:[%s325_s22] sm:$0xff] }
 0x1e6   : > { %s369_s21 = scalar_lea.vmem [#allocation11], %s1355_s2  ;;  %s362_s10 = scalar_lea.vmem [#allocation10], %s1355_s2 }
 0x1e7   : > { %s466_s11 = sshll.u32 %s369_s21, 4  ;;  %s453_s17 = sshll.u32 %s362_s10, 4  ;;  %s1429_s11 = int_to_ptr.vmem [resolvable:$true] %s466_s11  ;;  %s1437_s17 = int_to_ptr.vmem [resolvable:$true] %s453_s17 }
 0x1e8   : > { %s1425_s20 = scalar_lea.hbm %s1544_s5, %s1390_s18  ;;  %s479_s13 = sshll.u32 %s376_s30, 4  ;;  %s1447_s13 = int_to_ptr.vmem [resolvable:$true] %s479_s13 }
 0x1e9   : > { %s1435_s29 = scalar_lea.hbm %s1543_s4, %s1390_s18  ;;  %s1445_s3 = scalar_lea.hbm %s1545_s6, %s1390_s18 }
 0x1ea   : > { %s1451_s23 = scalar_lea.sflag [#allocation12], %s321_s9  ;;  %s961_s12 = scalar_lea.vmem %s1429_s11, 128 }
 0x1eb   : > { %p962_p5 = scmp.ne.s32.totalorder %s1429_s11, %s961_s12  ;;  %s1111_s14 = smov [#allocation11]  }
 0x1ec   : > { %s965_s22 = sshll.u32 %s1111_s14, 4  ;;  %s966_s22 = int_to_ptr.vmem [resolvable:$false] %s965_s22 }
 0x1ed   : > { %p963_p9 = pnand %p962_p5, %p1572_p7  ;;  %p968_p4 = scmp.lt.s32.totalorder %s1429_s11, %s966_s22 }
 0x1ef   : > { %p964_p1 = pneg %p963_p9 }
 0x253   : > { %v407_v18 = vpop.permute.xlu1 %406 }
 0x254   : > { %v409_v19 = vmul.f32 %v407_v18, %v1379_v0  ;;  %v421_v20 = vmul.f32 %v420_v17, %v407_v18 }
 0x257   : > { %v413_v21 = vpop.permute.xlu1 %412 }
 0x258   : > { %v415_v22 = vadd.f32 %v413_v21, %v409_v19  ;;  %v422_v23 = vadd.f32 %v421_v20, %v413_v21 }
 0x25a   : > { %423 = vst.msk [vmem:[%s369_s21] sm:$0xff] %vm385_vm0, %v422_v23  ;;  %416 = vst.msk [vmem:[%s362_s10] sm:$0xff] %vm385_vm0, %v415_v22  ;;  %s967_s21 = scalar_lea.vmem %s966_s22, 256 }
 0x25b   : > { %p969_p2 = scmp.lt.s32.totalorder %s967_s21, %s961_s12 }
 0x25d   : > { %p970_p6 = por %p969_p2, %p968_p4 }
 0x25f   : > { %p971_p11 = pnand %p970_p6, %p964_p1 }
 0x261   : > { %974 = shalt.err (!%p971_p11)
}
 0x262   : > { %s975_s28 = scalar_lea.hbm %s1425_s20, 128  ;;  %s979_s10 = scalar_lea.hbm %s1544_s5, 256 }
 0x263   : > { %p976_p0 = scmp.ne.s32.totalorder %s1425_s20, %s975_s28  ;;  %p980_p3 = scmp.lt.u32.totalorder %s1425_s20, %s1544_s5 }
 0x264   : > { %p981_p10 = scmp.lt.u32.totalorder %s979_s10, %s975_s28  ;;  %p983_p5 = scmp.lt.u32.totalorder %s975_s28, %s1425_s20 }
 0x265   : > { %p977_p8 = pnand %p976_p0, %p1572_p7 }
 0x266   : > { %p982_p13 = por %p981_p10, %p980_p3 }
 0x267   : > { %p978_p12 = pneg %p977_p8 }
 0x268   : > { %p984_p9 = por %p983_p5, %p982_p13 }
 0x26a   : > { %p985_p1 = pnand %p984_p9, %p978_p12 }
 0x26c   : > { %988 = shalt.err (!%p985_p1)
}
 0x26d   : > { %738 = dma.vmem_to_hbm [thread:$0]  (%p1572_p7), %s1429_s11, 128, %s1425_s20, %s1451_s23  }
 0x26e   : > { %s425_s30 = scalar_lea.sflag [#allocation4], %s1352_s16  ;;  %s989_s12 = scalar_lea.vmem %s1437_s17, 128 }
 0x26f   : > { %p990_p4 = scmp.ne.s32.totalorder %s1437_s17, %s989_s12  ;;  %s1112_s14 = smov [#allocation10]  }
 0x270   : > { %s993_s22 = sshll.u32 %s1112_s14, 4  ;;  %s994_s22 = int_to_ptr.vmem [resolvable:$false] %s993_s22 }
 0x271   : > { %p991_p2 = pnand %p990_p4, %p1572_p7  ;;  %s995_s21 = scalar_lea.vmem %s994_s22, 256 }
 0x272   : > { %p996_p11 = scmp.lt.s32.totalorder %s1437_s17, %s994_s22  ;;  %p997_p0 = scmp.lt.s32.totalorder %s995_s21, %s989_s12 }
 0x273   : > { %p992_p6 = pneg %p991_p2 }
 0x274   : > { %p998_p8 = por %p997_p0, %p996_p11 }
 0x276   : > { %p999_p12 = pnand %p998_p8, %p992_p6 }
 0x278   : > { %1002 = shalt.err (!%p999_p12)
}
 0x279   : > { %s1003_s16 = scalar_lea.hbm %s1435_s29, 128  ;;  %s1007_s28 = scalar_lea.hbm %s1543_s4, 256 }
 0x27a   : > { %p1004_p3 = scmp.ne.s32.totalorder %s1435_s29, %s1003_s16  ;;  %p1008_p5 = scmp.lt.u32.totalorder %s1435_s29, %s1543_s4 }
 0x27b   : > { %p1009_p9 = scmp.lt.u32.totalorder %s1007_s28, %s1003_s16  ;;  %p1011_p4 = scmp.lt.u32.totalorder %s1003_s16, %s1435_s29 }
 0x27c   : > { %p1005_p10 = pnand %p1004_p3, %p1572_p7 }
 0x27d   : > { %p1010_p1 = por %p1009_p9, %p1008_p5 }
 0x27e   : > { %p1006_p13 = pneg %p1005_p10 }
 0x27f   : > { %p1012_p2 = por %p1011_p4, %p1010_p1 }
 0x281   : > { %p1013_p6 = pnand %p1012_p2, %p1006_p13 }
 0x283   : > { %1016 = shalt.err (!%p1013_p6)
}
 0x284   : > { %737 = dma.vmem_to_hbm [thread:$0]  (%p1572_p7), %s1437_s17, 128, %s1435_s29, %s425_s30  }
 0x285   : > { %s1017_s10 = scalar_lea.vmem %s1447_s13, 128  ;;  %s1113_s26 = smov [#allocation13]  }
 0x286   : > { %p1018_p11 = scmp.ne.s32.totalorder %s1447_s13, %s1017_s10  ;;  %s1021_s2 = sshll.u32 %s1113_s26, 4  ;;  %s1022_s2 = int_to_ptr.vmem [resolvable:$false] %s1021_s2 }
 0x287   : > { %s1023_s12 = scalar_lea.vmem %s1022_s2, 256  ;;  %p1024_p12 = scmp.lt.s32.totalorder %s1447_s13, %s1022_s2 }
 0x288   : > { %p1019_p0 = pnand %p1018_p11, %p1572_p7  ;;  %p1025_p3 = scmp.lt.s32.totalorder %s1023_s12, %s1017_s10 }
 0x28a   : > { %p1020_p8 = pneg %p1019_p0  ;;  %p1026_p10 = por %p1025_p3, %p1024_p12 }
 0x28c   : > { %p1027_p13 = pnand %p1026_p10, %p1020_p8 }
 0x28e   : > { %1030 = shalt.err (!%p1027_p13)
}
 0x28f   : > { %s1031_s17 = scalar_lea.hbm %s1445_s3, 128  ;;  %s1035_s14 = scalar_lea.hbm %s1545_s6, 256 }
 0x290   : > { %p1032_p5 = scmp.ne.s32.totalorder %s1445_s3, %s1031_s17  ;;  %p1036_p4 = scmp.lt.u32.totalorder %s1445_s3, %s1545_s6 }
 0x291   : > { %p1037_p2 = scmp.lt.u32.totalorder %s1035_s14, %s1031_s17  ;;  %p1039_p11 = scmp.lt.u32.totalorder %s1031_s17, %s1445_s3 }
 0x292   : > { %p1033_p9 = pnand %p1032_p5, %p1572_p7 }
 0x293   : > { %p1038_p6 = por %p1037_p2, %p1036_p4 }
 0x294   : > { %p1034_p1 = pneg %p1033_p9 }
 0x295   : > { %p1040_p0 = por %p1039_p11, %p1038_p6 }
 0x297   : > { %p1041_p8 = pnand %p1040_p0, %p1034_p1 }
 0x299   : > { %1044 = shalt.err (!%p1041_p8)
}
 0x29a   : > { %739 = dma.vmem_to_hbm [thread:$0]  (%p1572_p7), %s1447_s13, 128, %s1445_s3, %s1451_s23  }
 0x29b PF: > { %s504_s16 = sand.u32 1, %s1091_s24   ;;  %p1573_p12 = scmp.ne.s32.totalorder %s1557_s8, 0 }
 0x29c   : > { %p1574_p3 = scmp.ge.s32.totalorder %s1103_s27, 2  ;;  %s505_s11 = scalar_lea.sflag [#allocation4], %s504_s16 }
 0x29e   : > { %p760_p10 = pnand %p1574_p3, %p1573_p12 }
 0x2a0   : > { %1078 = dma.done.wait (!%p760_p10), %s505_s11, 128  }
 0x2a1   : > { %1080 = vsyncadd (!%p760_p10), %s505_s11, 4294967168  ;;  %s1575_s20 = sadd.s32 4294967294, %s1103_s27  }
 0x2a2   : > { %s513_s28 = sand.u32 1, %s1575_s20  }
 0x2a3   : > { %s514_s9 = scalar_lea.sflag [#allocation12], %s513_s28 }
 0x2a4   : > { %1082 = dma.done.wait (!%p760_p10), %s514_s9, 256  }
 0x2a5   : > { %1084 = vsyncadd (!%p760_p10), %s514_s9, 4294967040  ;;  %s532_s19 = scalar_lea.sflag [#allocation15], %s504_s16 }
 0x2a6   : > { %1086 = dma.done.wait (!%p760_p10), %s532_s19, 128  }
 0x2a7   : > { %1088 = vsyncadd (!%p760_p10), %s532_s19, 4294967168  ;;  %s1576_s13 = sld [smem:[#allocation23_spill]]  ;;  %s1577_s26 = sld [smem:[#allocation24_spill]] }
 0x2a8   : > { %p31_p7 = scmp.ge.s32.totalorder %s1212_s15, 4   ;;  %s1578_s24 = smov %s1095_s25 }
 0x2a9   : > { %s1580_s27 = smov %s1212_s15 }
 0x2aa   :  { %33 = sbr.rel (!%p31_p7) target bundleno = 15 (0xf), region = 151 }
 0x2ad   : > { %s1579_s25 = smov %s1576_s13 }
 0x2b1   :  { %537 = vsyncpa [#allocation3], 1 }
 0x2b2   :  { %539 = vsyncpa [#allocation3 + $0x1], 1 }
 0x2b3   :  { %540 = vsyncpa [#allocation6], 1 }
 0x2b4   :  { %542 = vsyncpa [#allocation6 + $0x1], 1 }
 0x2b5   :  { %543 = vsyncpa [#allocation9], 1 }
 0x2b6   :  { %544 = vsyncpa [#allocation4], 1 }
 0x2b7   :  { %546 = vsyncpa [#allocation4 + $0x1], 1 }
 0x2b8   :  { %547 = vsyncpa [#allocation12], 1 }
 0x2b9   :  { %549 = vsyncpa [#allocation12 + $0x1], 1 }
 0x2ba   :  { %550 = vsyncpa [#allocation15], 1 }
 0x2bb   :  { %552 = vsyncpa [#allocation15 + $0x1], 1 }

</bundles_post_ra>
